<compile_context>
chip_gen: v5e
topology: v5e:2x2
jax: 0.10.0
libtpu: 0.0.40
codegen_flags: <defaults>
</compile_context>

<pallas_src>
import functools

import jax
import jax.numpy as jnp
from jax.experimental import pallas as pl
from jax.experimental.pallas import tpu as pltpu


def _cbr_kernel(x_ref, w_ref, shift_ref, o_ref, xpad_ref, *, H, W):
    HW = H * W
    pad_l = W + 1                       # guard cells on each side of the flat axis
    cin = x_ref.shape[1]                # true input channels
    rb_pad = xpad_ref.shape[1]          # lane-aligned padded width

    # In-kernel guard + channel padding (replaces the old host-side jnp.pad):
    # zero the scratch, then drop the raw (Cin, HW) slab at lane offset pad_l.
    # Extra channels (Cin -> Cin_pad) stay zero so sublane tiles are aligned.
    xpad_ref[...] = jnp.zeros_like(xpad_ref)
    xpad_ref[:cin, pad_l:pad_l + HW] = x_ref[0].astype(xpad_ref.dtype)

    x_c = xpad_ref[...]                                  # buffer for ox == 0 taps

    # Two pre-masked buffers replace the six per-tap selects.  The H boundary
    # is absorbed by the zero guard cells; the W boundary (row wrap in the
    # flat layout) is handled by zeroing the input column a wrapped read
    # would land on: column W-1 for ox = -1, column 0 for ox = +1.
    col = jax.lax.broadcasted_iota(jnp.int32, (1, rb_pad), 1)
    col_in = (col - pad_l) % W                           # input-column index
    x_m1 = jnp.where(col_in == W - 1, 0.0, x_c)          # buffer for ox == -1
    x_p1 = jnp.where(col_in == 0, 0.0, x_c)              # buffer for ox == +1
    srcs = (x_m1, x_c, x_p1)

    # im2col: stack the 9 static lane-offset taps into one (9*Cin_pad, HW)
    # matrix and issue a single fat MXU GEMM instead of nine K=Cin matmuls.
    taps = []
    for dy in range(3):
        for dx in range(3):
            off = pad_l + (dy - 1) * W + (dx - 1)        # static lane offset
            taps.append(srcs[dx][:, off:off + HW])
    patch = jnp.concatenate(taps, axis=0)                # (9*Cin_pad, HW)

    # BN (inference) + conv bias are pre-folded into w/shift on the host,
    # so the epilogue is just shift-add + ReLU before the single store.
    acc = jnp.dot(w_ref[...], patch, preferred_element_type=jnp.float32)
    y = acc + shift_ref[...]
    o_ref[0] = jnp.maximum(y, 0.0).astype(o_ref.dtype)


def cbr_forward(x, w, b, gamma, beta, running_mean, running_var, eps=1e-5):
    """x: (B, Cin, H, W); w: (Cout, Cin, 3, 3); b/gamma/beta/mean/var: (Cout,)."""
    B, Cin, H, W = x.shape
    Cout = w.shape[0]
    HW = H * W
    pad_l = W + 1
    rb = HW + 2 * pad_l
    rb_pad = ((rb + 127) // 128) * 128          # lane-align the padded axis
    Cin_pad = ((Cin + 7) // 8) * 8              # sublane-align the K pieces

    f32 = jnp.float32
    # Fold conv bias + inference BatchNorm into a scaled weight and one shift.
    scale = gamma.astype(f32) * jax.lax.rsqrt(running_var.astype(f32) + eps)
    shift = beta.astype(f32) + (b.astype(f32) - running_mean.astype(f32)) * scale
    w_f = w.astype(f32) * scale[:, None, None, None]     # (Cout, Cin, 3, 3)
    # K ordering must match the kernel's (dy, dx, cin_pad) im2col stacking.
    w_mat = jnp.transpose(w_f, (0, 2, 3, 1))             # (Cout, 3, 3, Cin)
    w_mat = jnp.pad(w_mat, ((0, 0), (0, 0), (0, 0), (0, Cin_pad - Cin)))
    w_mat = w_mat.reshape(Cout, 9 * Cin_pad)
    shift_col = shift.reshape(Cout, 1)

    x_flat = x.reshape(B, Cin, HW)                       # no host-side padding

    out = pl.pallas_call(
        functools.partial(_cbr_kernel, H=H, W=W),
        out_shape=jax.ShapeDtypeStruct((B, Cout, HW), x.dtype),
        grid=(B,),
        in_specs=[
            pl.BlockSpec((1, Cin, HW), lambda i: (i, 0, 0)),        # x
            pl.BlockSpec((Cout, 9 * Cin_pad), lambda i: (0, 0)),    # folded w
            pl.BlockSpec((Cout, 1), lambda i: (0, 0)),              # folded shift
        ],
        out_specs=pl.BlockSpec((1, Cout, HW), lambda i: (i, 0, 0)),
        scratch_shapes=[pltpu.VMEM((Cin_pad, rb_pad), jnp.float32)],
        compiler_params=pltpu.CompilerParams(
            dimension_semantics=("parallel",)),
    )(x_flat, w_mat, shift_col)

    return out.reshape(B, Cout, H, W)


def cbr_reference(x, w, b, gamma, beta, running_mean, running_var, eps=1e-5):
    """Pure-JAX reference: Conv2d(3x3, pad 1, stride 1, bias) + BN(eval) + ReLU."""
    y = jax.lax.conv_general_dilated(
        x, w, window_strides=(1, 1), padding=((1, 1), (1, 1)),
        dimension_numbers=("NCHW", "OIHW", "NCHW"))
    y = y + b[None, :, None, None]
    scale = gamma / jnp.sqrt(running_var + eps)
    y = (y - running_mean[None, :, None, None]) * scale[None, :, None, None] \
        + beta[None, :, None, None]
    return jnp.maximum(y, 0.0)


if __name__ == "__main__":
    key = jax.random.PRNGKey(0)
    ks = jax.random.split(key, 7)

    B, Cin, Cout, H, W = 2, 4, 8, 16, 16

    x = jax.random.normal(ks[0], (B, Cin, H, W), dtype=jnp.float32)
    w = jax.random.normal(ks[1], (Cout, Cin, 3, 3), dtype=jnp.float32) * 0.2
    b = jax.random.normal(ks[2], (Cout,), dtype=jnp.float32) * 0.1
    gamma = 1.0 + 0.1 * jax.random.normal(ks[3], (Cout,), dtype=jnp.float32)
    beta = 0.1 * jax.random.normal(ks[4], (Cout,), dtype=jnp.float32)
    running_mean = 0.1 * jax.random.normal(ks[5], (Cout,), dtype=jnp.float32)
    running_var = jax.random.uniform(ks[6], (Cout,), jnp.float32, 0.5, 1.5)

    out = cbr_forward(x, w, b, gamma, beta, running_mean, running_var)
    out = jax.block_until_ready(out)

    ref = cbr_reference(x, w, b, gamma, beta, running_mean, running_var)
    assert out.shape == ref.shape
    max_err = jnp.max(jnp.abs(out - ref))
    assert jnp.allclose(out, ref, rtol=1e-4, atol=1e-4), f"max err {max_err}"

    print("KERNEL_OK")
</pallas_src>

<mosaic_0001>
module attributes {stable_mosaic.version = 11 : i64} {
  func.func @_cbr_kernel(%arg0: i32, %arg1: memref<1x4x256xf32, #tpu.memory_space<vmem>>, %arg2: memref<8x72xf32, #tpu.memory_space<vmem>>, %arg3: memref<8x1xf32, #tpu.memory_space<vmem>>, %arg4: memref<1x8x256xf32, #tpu.memory_space<vmem>>, %arg5: memref<8x384xf32, #tpu.memory_space<vmem>>) attributes {dimension_semantics = [#tpu.dimension_semantics<parallel>], iteration_bounds = array<i64: 2>, scalar_prefetch = 0 : i64, scratch_operands = 1 : i64, tpu.core_type = #tpu.core_type<tc>, window_params = [{transform_indices = @transform_0, window_bounds = array<i64: 1, 4, 256>}, {pipeline_mode = #tpu.pipeline_mode<synchronous>, transform_indices = @transform_1, window_bounds = array<i64: 8, 72>}, {pipeline_mode = #tpu.pipeline_mode<synchronous>, transform_indices = @transform_2, window_bounds = array<i64: 8, 1>}, {transform_indices = @transform_3, window_bounds = array<i64: 1, 8, 256>}]} {
    %cst = arith.constant 0.000000e+00 : f32
    %0 = vector.broadcast %cst : f32 to vector<8x384xf32>
    %c0 = arith.constant 0 : index
    %c0_0 = arith.constant 0 : index
    %1 = vector.load %arg5[%c0, %c0_0] : memref<8x384xf32, #tpu.memory_space<vmem>>, vector<8x384xf32>
    tpu.vector_store %arg5[%c0, %c0_0], %0 {strides = array<i32>} : memref<8x384xf32, #tpu.memory_space<vmem>>, vector<8x384xf32>,
    %c0_1 = arith.constant 0 : index
    %c0_2 = arith.constant 0 : index
    %c0_3 = arith.constant 0 : index
    %2 = vector.load %arg1[%c0_1, %c0_2, %c0_3] : memref<1x4x256xf32, #tpu.memory_space<vmem>>, vector<1x4x256xf32>
    %3 = vector.shape_cast %2 : vector<1x4x256xf32> to vector<4x256xf32>
    %c0_4 = arith.constant 0 : index
    %c17 = arith.constant 17 : index
    %4 = vector.load %arg5[%c0_4, %c17] : memref<8x384xf32, #tpu.memory_space<vmem>>, vector<4x256xf32>
    tpu.vector_store %arg5[%c0_4, %c17], %3 {strides = array<i32>} : memref<8x384xf32, #tpu.memory_space<vmem>>, vector<4x256xf32>,
    %c0_5 = arith.constant 0 : index
    %c0_6 = arith.constant 0 : index
    %5 = vector.load %arg5[%c0_5, %c0_6] : memref<8x384xf32, #tpu.memory_space<vmem>>, vector<8x384xf32>
    %6 = tpu.iota {dimensions = array<i32: 1>} : vector<1x384xi32>
    %c17_i32 = arith.constant 17 : i32
    %7 = vector.broadcast %c17_i32 : i32 to vector<1x384xi32>
    %8 = arith.subi %6, %7 : vector<1x384xi32>
    %c16_i32 = arith.constant 16 : i32
    %c0_i32 = arith.constant 0 : i32
    %9 = arith.cmpi eq, %c16_i32, %c0_i32 : i32
    %c1_i32 = arith.constant 1 : i32
    %10 = arith.select %9, %c1_i32, %c16_i32 : i32
    %11 = vector.broadcast %10 : i32 to vector<1x384xi32>
    %12 = arith.remsi %8, %11 : vector<1x384xi32>
    %c0_i32_7 = arith.constant 0 : i32
    %13 = vector.broadcast %c0_i32_7 : i32 to vector<1x384xi32>
    %14 = arith.cmpi ne, %12, %13 : vector<1x384xi32>
    %c0_i32_8 = arith.constant 0 : i32
    %15 = vector.broadcast %c0_i32_8 : i32 to vector<1x384xi32>
    %16 = arith.cmpi slt, %12, %15 : vector<1x384xi32>
    %c0_i32_9 = arith.constant 0 : i32
    %17 = arith.cmpi slt, %10, %c0_i32_9 : i32
    %18 = vector.broadcast %17 : i1 to vector<1x384xi1>
    %19 = vector.broadcast %18 : vector<1x384xi1> to vector<1x384xi1>
    %20 = arith.xori %16, %19 : vector<1x384xi1>
    %21 = arith.andi %20, %14 : vector<1x384xi1>
    %22 = vector.broadcast %10 : i32 to vector<1x384xi32>
    %23 = arith.addi %12, %22 : vector<1x384xi32>
    %24 = arith.select %21, %23, %12 : vector<1x384xi1>, vector<1x384xi32>
    %c15_i32 = arith.constant 15 : i32
    %25 = vector.broadcast %c15_i32 : i32 to vector<1x384xi32>
    %26 = arith.cmpi eq, %24, %25 : vector<1x384xi32>
    %cst_10 = arith.constant 0.000000e+00 : f32
    %27 = vector.shape_cast %26 : vector<1x384xi1> to vector<1x384xi1>
    %28 = vector.broadcast %27 : vector<1x384xi1> to vector<8x384xi1>
    %29 = vector.broadcast %cst_10 : f32 to vector<8x384xf32>
    %30 = arith.select %28, %29, %5 : vector<8x384xi1>, vector<8x384xf32>
    %c0_i32_11 = arith.constant 0 : i32
    %31 = vector.broadcast %c0_i32_11 : i32 to vector<1x384xi32>
    %32 = arith.cmpi eq, %24, %31 : vector<1x384xi32>
    %cst_12 = arith.constant 0.000000e+00 : f32
    %33 = vector.shape_cast %32 : vector<1x384xi1> to vector<1x384xi1>
    %34 = vector.broadcast %33 : vector<1x384xi1> to vector<8x384xi1>
    %35 = vector.broadcast %cst_12 : f32 to vector<8x384xf32>
    %36 = arith.select %34, %35, %5 : vector<8x384xi1>, vector<8x384xf32>
    %37 = vector.extract_strided_slice %30 {offsets = [0, 0], sizes = [8, 256], strides = [1, 1]} : vector<8x384xf32> to vector<8x256xf32>
    %38 = vector.extract_strided_slice %5 {offsets = [0, 1], sizes = [8, 256], strides = [1, 1]} : vector<8x384xf32> to vector<8x256xf32>
    %39 = vector.extract_strided_slice %36 {offsets = [0, 2], sizes = [8, 256], strides = [1, 1]} : vector<8x384xf32> to vector<8x256xf32>
    %40 = vector.extract_strided_slice %30 {offsets = [0, 16], sizes = [8, 256], strides = [1, 1]} : vector<8x384xf32> to vector<8x256xf32>
    %41 = vector.extract_strided_slice %5 {offsets = [0, 17], sizes = [8, 256], strides = [1, 1]} : vector<8x384xf32> to vector<8x256xf32>
    %42 = vector.extract_strided_slice %36 {offsets = [0, 18], sizes = [8, 256], strides = [1, 1]} : vector<8x384xf32> to vector<8x256xf32>
    %43 = vector.extract_strided_slice %30 {offsets = [0, 32], sizes = [8, 256], strides = [1, 1]} : vector<8x384xf32> to vector<8x256xf32>
    %44 = vector.extract_strided_slice %5 {offsets = [0, 33], sizes = [8, 256], strides = [1, 1]} : vector<8x384xf32> to vector<8x256xf32>
    %45 = vector.extract_strided_slice %36 {offsets = [0, 34], sizes = [8, 256], strides = [1, 1]} : vector<8x384xf32> to vector<8x256xf32>
    %46 = tpu.concatenate %37, %38, %39, %40, %41, %42, %43, %44, %45 in 0 : vector<8x256xf32>, vector<8x256xf32>, vector<8x256xf32>, vector<8x256xf32>, vector<8x256xf32>, vector<8x256xf32>, vector<8x256xf32>, vector<8x256xf32>, vector<8x256xf32> -> vector<72x256xf32>
    %c0_13 = arith.constant 0 : index
    %c0_14 = arith.constant 0 : index
    %47 = vector.load %arg2[%c0_13, %c0_14] : memref<8x72xf32, #tpu.memory_space<vmem>>, vector<8x72xf32>
    %cst_15 = arith.constant dense<0.000000e+00> : vector<8x256xf32>
    %48 = tpu.matmul %47, %46, %cst_15 {dimension_numbers = #tpu.dot_dimension_numbers<[1], [0], [0], [1], [0, 0, 1, 1], [], []>} : vector<8x72xf32>, vector<72x256xf32>, vector<8x256xf32> -> vector<8x256xf32>
    %c0_16 = arith.constant 0 : index
    %c0_17 = arith.constant 0 : index
    %49 = vector.load %arg3[%c0_16, %c0_17] : memref<8x1xf32, #tpu.memory_space<vmem>>, vector<8x1xf32>
    %50 = vector.broadcast %49 : vector<8x1xf32> to vector<8x256xf32>
    %51 = arith.addf %48, %50 : vector<8x256xf32>
    %cst_18 = arith.constant 0.000000e+00 : f32
    %52 = vector.broadcast %cst_18 : f32 to vector<8x256xf32>
    %53 = arith.maximumf %51, %52 : vector<8x256xf32>
    %c0_19 = arith.constant 0 : index
    %c0_20 = arith.constant 0 : index
    %c0_21 = arith.constant 0 : index
    %54 = vector.load %arg4[%c0_19, %c0_20, %c0_21] : memref<1x8x256xf32, #tpu.memory_space<vmem>>, vector<1x8x256xf32>
    %55 = vector.shape_cast %54 : vector<1x8x256xf32> to vector<8x256xf32>
    %56 = vector.shape_cast %53 : vector<8x256xf32> to vector<1x8x256xf32>
    tpu.vector_store %arg4[%c0_19, %c0_20, %c0_21], %56 {strides = array<i32>} : memref<1x8x256xf32, #tpu.memory_space<vmem>>, vector<1x8x256xf32>,
    return
  }
  func.func @transform_0(%arg0: i32) -> (i32, i32, i32) {
    %c0_i32 = arith.constant 0 : i32
    %c0_i32_0 = arith.constant 0 : i32
    %c0_i32_1 = arith.constant 0 : i32
    return %arg0, %c0_i32, %c0_i32_0 : i32, i32, i32
  }
  func.func @transform_1(%arg0: i32) -> (i32, i32) {
    %c0_i32 = arith.constant 0 : i32
    %c0_i32_0 = arith.constant 0 : i32
    %c0_i32_1 = arith.constant 0 : i32
    return %c0_i32, %c0_i32_0 : i32, i32
  }
  func.func @transform_2(%arg0: i32) -> (i32, i32) {
    %c0_i32 = arith.constant 0 : i32
    %c0_i32_0 = arith.constant 0 : i32
    %c0_i32_1 = arith.constant 0 : i32
    return %c0_i32, %c0_i32_0 : i32, i32
  }
  func.func @transform_3(%arg0: i32) -> (i32, i32, i32) {
    %c0_i32 = arith.constant 0 : i32
    %c0_i32_0 = arith.constant 0 : i32
    %c0_i32_1 = arith.constant 0 : i32
    return %arg0, %c0_i32, %c0_i32_0 : i32, i32, i32
  }
}

</mosaic_0001>

<bundles_post_ra>
// kernel: tpu_custom_call.1
= control target key start
LH: loop header
LB: loop body
LE: loop exit
PB: predicated region body
PF: predicated region fallthrough
CT: control target
= control target key end

     0   :  { %8 = vsyncpa [#allocation4], 0  ;;  %s934_s0 = inlined_call_operand.hbm [shape: f32[2,4,256], index: 0, kind: input, shape index: {}]   ;;  %s935_s1 = inlined_call_operand.vmem [shape: f32[8,72], index: 1, kind: input, shape index: {}]   ;;  %s936_s2 = inlined_call_operand.vmem [shape: f32[8,1], index: 2, kind: input, shape index: {}]   ;;  %s937_s3 = inlined_call_operand.hbm [shape: f32[2,8,256], index: 3, kind: output, shape index: {}]  }
   0x1   :  { %10 = vsyncpa [#allocation4 + $0x1], 0 }
   0x2   :  { %11 = vsyncpa [#allocation5], 0 }
   0x3   :  { %13 = vsyncpa [#allocation5 + $0x1], 0  ;;  %s772_s12 = smov 0   ;;  %s774_s13 = smov 0  }
   0x4   :  { %s776_s14 = smov 0   ;;  %s778_s15 = smov 0  }
   0x5 LB: > { %s793_s16 = sadd.s32 4294967295, %s739_s15   ;;  %s520_s17 = sadd.s32 4294967294, %s739_s15   ;;  %s739_s15 = sphi %s778_s15, %s949_s15   ;;  %s735_s14 = sphi %s776_s14, %s948_s14   ;;  %s731_s13 = sphi %s774_s13, %s947_s13   ;;  %s727_s12 = sphi %s772_s12, %s946_s12  }
   0x6   : > { %s797_s18 = sadd.s32 1, %s739_s15   ;;  %s26_s19 = sadd.s32 1, %s735_s14 }
   0x7   : > { %s23_s20 = ssub.s32 %s739_s15, %s797_s18  ;;  %p33_p0 = scmp.ne.s32.totalorder %s735_s14, %s731_s13 }
   0x8   : > { %p24_p1 = scmp.eq.s32.totalorder %s23_s20, 0  ;;  %p34_p2 = scmp.eq.s32.totalorder %s739_s15, 0 }
   0x9   : > { %p39_p3 = scmp.ne.s32.totalorder %s731_s13, %s727_s12  ;;  %p40_p4 = scmp.eq.s32.totalorder %s793_s16, 0 }
   0xa   : > { %s809_s21 = scalar_select %p24_p1, %s735_s14, %s26_s19  }
   0xb   : > { %p811_p5 = por %p34_p2, %p33_p0  ;;  %p815_p6 = por %p40_p4, %p39_p3 }
   0xc   : > { %p105_p7 = scmp.eq.s32.totalorder %s793_s16, 1  ;;  %p111_p8 = scmp.eq.s32.totalorder %s520_s17, 1 }
   0xd   : > { %p557_p10 = scmp.lt.s32.totalorder %s739_s15, 2  ;;  %s137_s26 = sand.u32 1, %s735_s14  }
   0xe   : > { %p822_p11 = por %p105_p7, %p33_p0  ;;  %p826_p12 = por %p111_p8, %p39_p3 }
   0xf   : > { %s543_s27 = sshll.u32 %s739_s15, 3  ;;  %s523_s28 = sshll.u32 %s137_s26, 3 }
  0x10   : > { %s146_s4 = scalar_lea.hbm %s934_s0, %s543_s27  ;;  %s141_s6 = scalar_lea.vmem [#allocation3], %s523_s28 }
  0x11   : > { %s148_s5 = sshll.u32 %s146_s4, 4  ;;  %s150_s7 = sshll.u32 %s141_s6, 4  ;;  %s149_s5 = int_to_ptr.hbm [resolvable:$true] %s148_s5  ;;  %s151_s7 = int_to_ptr.vmem [resolvable:$true] %s150_s7 }
  0x12   : > { %p837_p13 = pnand %p557_p10, %p811_p5  ;;  %p526_p0 = scmp.ge.s32.totalorder %s739_s15, 1 }
  0x13   : > { %p155_p1 = scmp.lt.s32.totalorder %s739_s15, 3  ;;  %s138_s9 = scalar_lea.sflag [#allocation4], %s137_s26 }
  0x14   : > { %s643_s10 = sshra.s32 %s149_s5, 4  ;;  %p647_p3 = pneg %p837_p13  ;;  %s644_s10 = int_to_ptr.hbm [resolvable:$true] %s643_s10 }
  0x15   : > { %s645_s11 = scalar_lea.hbm %s644_s10, 8  ;;  %s650_s20 = scalar_lea.hbm %s934_s0, 16 }
  0x16   : > { %p646_p2 = scmp.ne.s32.totalorder %s644_s10, %s645_s11  ;;  %p651_p5 = scmp.lt.s32.totalorder %s644_s10, %s934_s0 }
  0x17   : > { %p652_p8 = scmp.lt.s32.totalorder %s650_s20, %s645_s11 }
  0x18   : > { %p648_p4 = pnand %p647_p3, %p646_p2 }
  0x19   : > { %p653_p10 = por %p652_p8, %p651_p5 }
  0x1a   : > { %p649_p7 = pneg %p648_p4 }
  0x1c   : > { %p654_p9 = pnand %p653_p10, %p649_p7 }
  0x1e   : > { %657 = shalt.err (!%p654_p9)
}
  0x1f   : > { %552 = dma.hbm_to_vmem [thread:$0]  (!%p837_p13), %s149_s5, 128, %s151_s7, %s138_s9  }
  0x20   : > { %p156_p2 = pnand %p526_p0, %p155_p1 }
  0x21   : > { %s858_s26 = sand.u32 (!%p156_p2), 1, %s731_s13  }
  0x22   : > { %159 = sbr.rel (%p156_p2) target bundleno = 479 (0x1df), region = 32  ;;  %s527_s28 = sshll.u32 (!%p156_p2), %s858_s26, 3 }
  0x23   : > { %s162_s29 = scalar_lea.sflag (!%p156_p2), [#allocation4], %s858_s26  ;;  %s165_s30 = scalar_lea.vmem (!%p156_p2), [#allocation3], %s527_s28 }
  0x27   : > { %718 = dma.done.wait (%p815_p6), %s162_s29, 128  }
  0x28   : > { %720 = vsyncadd (%p815_p6), %s162_s29, 4294967168  ;;  %v741_v0 = vmov 0.0   ;;  %v192_v1 = vld [vmem:[%s165_s30] sm:$0xff]  ;;  %s742_s4 = smov 17   ;;  %v214_v4 = vlaneseq  ;;  %vm206_vm1 = vcmask 1043592   ;;  %vm201_vm2 = vcmask 138240  }
  0x29   : > { %189 = vst [vmem:[#allocation2] sm:$0xff] %v741_v0  ;;  %vm209_vm3 = vcmask 134144   ;;  %s743_s23 = smov 95   ;;  %s744_s5 = smov 110   ;;  %v379_v42 = vld [vmem:[%s936_s2] sm:$0xff]  ;;  %v751_v45 = vmov 0  }
  0x2a   : > { %190 = vst [vmem:[#allocation2 + $0x8] sm:$0xff] %v741_v0  ;;  %v215_v5 = vand.u32 127, %v214_v4  ;;  %s745_s6 = smov 94   ;;  %s746_s7 = smov 111   ;;  %642 = vset.pattern.permute.xlu0 %v751_v45  ;;  %vm373_vm13 = vcmask 769024   ;;  %vm362_vm14 = vcmask 777216  }
  0x2b   : > { %191 = vst [vmem:[#allocation2 + $0x10] sm:$0xff] %v741_v0  ;;  %s747_s8 = smov 96   ;;  %s748_s9 = smov 112   ;;  %vm351_vm15 = vcmask 785408  }
  0x2c   : > { %194 = vst [vmem:[#allocation1] ss:$2 sm:$0xff] %v192_v1  ;;  %v529_v6 = vadd.s32 4294967279, %v215_v5  ;;  %v217_v11 = vadd.s32 256, %v215_v5  ;;  %v216_v14 = vadd.s32 128, %v215_v5  ;;  %s749_s10 = smov 126  }
  0x2d   : > { %s750_s11 = smov 127   ;;  %s528_s27 = sshll.u32 %s858_s26, 4 }
  0x2e   : > { %v222_v7 = vsub.s32 0, %v529_v6  ;;  %vm221_vm0 = vcmp.lt.s32.totalorder %v529_v6, 0  ;;  %v531_v13 = vadd.s32 4294967279, %v217_v11  ;;  %v530_v19 = vadd.s32 4294967279, %v216_v14  ;;  %s544_s28 = sshll.u32 %s793_s16, 4  ;;  %s434_s16 = scalar_lea.sflag [#allocation5], %s858_s26 }
  0x30   : > { %v223_v8 = vsel %vm221_vm0, %v222_v7, %v529_v6  ;;  %v239_v18 = vand.u32 15, %v531_v13  ;;  %v232_v21 = vand.u32 15, %v530_v19 }
  0x31   : > { %v225_v10 = vand.u32 15, %v223_v8 }
  0x32   : > { %vm271_vm6 = vcmp.eq.s32.totalorder %v239_v18, 0  ;;  %vm870_vm8 = vcmp.eq.s32.totalorder %v232_v21, 15  ;;  %vm259_vm10 = vcmp.eq.s32.totalorder %v239_v18, 15  ;;  %vm270_vm11 = vcmp.eq.s32.totalorder %v232_v21, 0 }
  0x33   : > { %v195_v2 = vld.sshfl [vmem:[#allocation1] sm:$0xff pattern:$0x75316420]  ;;  %v196_v3 = vld.sshfl [vmem:[#allocation1 + $0x8] sm:$0xff pattern:$0x75316420] }
  0x34   : > { %197 = vrot.lane.b32.xlu0 %v195_v2, %s742_s4  ;;  %v226_v12 = vsub.s32 0, %v225_v10 }
  0x36   : > { %v227_v16 = vsel %vm221_vm0, %v226_v12, %v225_v10  ;;  %vm340_vm0 = vcmask 900096  }
  0x37   : > { %vm242_vm4 = vcmp.ne.s32.totalorder %v227_v16, 0  ;;  %vm245_vm5 = vcmp.lt.s32.totalorder %v227_v16, 0  ;;  %v251_v20 = vadd.s32 16, %v227_v16 }
  0x38   : > { %vm248_vm7 = vmand %vm245_vm5, %vm242_vm4  ;;  %vm290_vm4 = vcmask 1039360  }
  0x39   : > { %v866_v24 = vsel %vm248_vm7, %v251_v20, %v227_v16  ;;  %vm385_vm7 = vcmask 588800  }
  0x3a   : > { %vm257_vm9 = vcmp.eq.s32.totalorder %v866_v24, 15  ;;  %vm269_vm12 = vcmp.eq.s32.totalorder %v866_v24, 0 }
  0x3b   : > { %vm532_vm5 = vmneg %vm257_vm9 }
  0x3c   : > { %199 = vrot.lane.b32.xlu0 %v196_v3, %s742_s4  ;;  %s445_s4 = scalar_lea.hbm %s937_s3, %s544_s28 }
  0xa6   : > { %v198_v9 = vpop.permute.xlu0 %197 }
  0xa7   : > { %207 = vst.msk [vmem:[#allocation2] sm:$0xf] %vm206_vm1, %v198_v9  ;;  %vm329_vm1 = vcmask 908288  }
  0xae   : > { %v200_v15 = vpop.permute.xlu0 %199  ;;  %v874_v27 = vld [vmem:[#allocation2] sm:$0xff] }
  0xaf   : > { %v202_v17 = vsel %vm201_vm2, %v198_v9, %v200_v15  ;;  %210 = vst.msk [vmem:[#allocation2 + $0x10] sm:$0xf] %vm209_vm3, %v200_v15  ;;  %v266_v29 = vsel %vm257_vm9, 0.0, %v874_v27  ;;  %v278_v34 = vsel %vm269_vm12, 0.0, %v874_v27  ;;  %vm318_vm2 = vcmask 916480  }
  0xb0   : > { %208 = vst [vmem:[#allocation2 + $0x8] sm:$0xf] %v202_v17  ;;  %vm304_vm3 = vcmask 1031168  }
  0xb6   : > { %v213_v22 = vld [vmem:[#allocation2 + $0x10] sm:$0xff] }
  0xb7   : > { %360 = vrot.lane.b32.xlu2 %v213_v22, %s743_s23  ;;  %v280_v23 = vsel %vm271_vm6, 0.0, %v213_v22  ;;  %v868_v25 = vld [vmem:[#allocation2 + $0x8] sm:$0xff]  ;;  %v268_v31 = vsel %vm259_vm10, 0.0, %v213_v22  ;;  %vm535_vm6 = vmneg %vm870_vm8 }
  0xb8   : > { %338 = vrot.lane.b32.xlu0 %v280_v23, %s744_s5  ;;  %371 = vrot.lane.b32.xlu1 %v280_v23, %s745_s6  ;;  %v267_v28 = vsel %vm870_vm8, 0.0, %v868_v25  ;;  %v602_v32 = vpack.i.bf16 %v868_v25, %v874_v27  ;;  %v279_v33 = vsel %vm270_vm11, 0.0, %v868_v25 }
  0xb9   : > { %v617_v30 = vpack.i.bf16 %v267_v28, %v266_v29  ;;  %v622_v35 = vpack.i.bf16 %v279_v33, %v278_v34 }
  0xbf   : > { %327 = vrot.lane.b32.xlu2 %v213_v22, %s746_s7 }
  0xc0   : > { %349 = vrot.lane.b32.xlu1 %v268_v31, %s747_s8  ;;  %618 = vrot.lane.b32.xlu0 %v617_v30, %s747_s8 }
  0xc7   : > { %603 = vrot.lane.b32.xlu2 %v602_v32, %s743_s23  ;;  %s188_s23 = scalar_lea.vmem [#allocation6], %s528_s27 }
  0xc8   : > { %608 = vrot.lane.b32.xlu1 %v602_v32, %s746_s7  ;;  %628 = vrot.lane.b32.xlu0 %v617_v30, %s748_s9 }
  0xcf   : > { %623 = vrot.lane.b32.xlu2 %v622_v35, %s744_s5  ;;  %s447_s5 = sshll.u32 %s188_s23, 4  ;;  %s448_s5 = int_to_ptr.vmem [resolvable:$true] %s447_s5 }
  0xd0   : > { %613 = vrot.lane.b32.xlu1 %v622_v35, %s745_s6  ;;  %302 = vrot.lane.b32.xlu0 %v280_v23, %s749_s10  ;;  %s449_s6 = sshll.u32 %s445_s4, 4  ;;  %s450_s6 = int_to_ptr.hbm [resolvable:$true] %s449_s6 }
  0xd1   : > { %s687_s7 = sshra.s32 %s450_s6, 4  ;;  %s688_s7 = int_to_ptr.hbm [resolvable:$true] %s687_s7 }
  0xd2   : > { %s689_s8 = scalar_lea.hbm %s688_s7, 16  ;;  %p694_p0 = scmp.lt.s32.totalorder %s688_s7, %s937_s3 }
  0xd3   : > { %p690_p6 = scmp.ne.s32.totalorder %s688_s7, %s689_s8 }
  0xd5   : > { %p691_p9 = pnand %p690_p6, %p822_p11 }
  0xd7   : > { %633 = vrot.lane.b32.xlu2 %v622_v35, %s749_s10  ;;  %p692_p13 = pneg %p691_p9 }
  0xd8   : > { %316 = vrot.lane.b32.xlu1 %v268_v31, %s748_s9  ;;  %382 = vperm.xlu0 %642, %v379_v42  }
  0xdf   : > { %288 = vrot.lane.b32.xlu2 %v213_v22, %s750_s11  ;;  %v378_v22 = vld [vmem:[%s935_s1] sm:$0xff] }
  0xe0   : > { %638 = vrot.lane.b32.xlu1 %v602_v32, %s750_s11  ;;  %s693_s11 = scalar_lea.hbm %s937_s3, 32 }
  0xe1   : > { %p695_p1 = scmp.lt.s32.totalorder %s693_s11, %s689_s8 }
  0xe3   : > { %p696_p3 = por %p695_p1, %p694_p0 }
  0xe5   : > { %p697_p4 = pnand %p696_p3, %p692_p13 }
 0x111   : > { %v361_v36 = vpop.permute.xlu2 %360 }
 0x119   : > { %v328_v38 = vpop.permute.xlu2 %327 }
 0x121   : > { %v604_v41 = vpop.permute.xlu2 %603 }
 0x122   : > { %v606_v48 = vunpack.i.h.bf16 %v604_v41  ;;  %v605_v49 = vunpack.i.l.bf16 %v604_v41 }
 0x124   : > { %v363_v59 = vsel %vm362_vm14, %v605_v49, %v606_v48  ;;  %v364_v60 = vsel %vm362_vm14, %v606_v48, %v361_v36 }
 0x129   : > { %v624_v46 = vpop.permute.xlu2 %623 }
 0x12a   : > { %v372_v37 = vpop.permute.xlu1 %371  ;;  %v339_v39 = vpop.permute.xlu0 %338  ;;  %v626_v57 = vunpack.i.h.bf16 %v624_v46  ;;  %v625_v58 = vunpack.i.l.bf16 %v624_v46 }
 0x12c   : > { %v341_v5 = vsel %vm340_vm0, %v625_v58, %v626_v57  ;;  %v342_v6 = vsel %vm340_vm0, %v626_v57, %v339_v39 }
 0x131   : > { %v634_v1 = vpop.permute.xlu2 %633 }
 0x132   : > { %v350_v40 = vpop.permute.xlu1 %349  ;;  %v619_v43 = vpop.permute.xlu0 %618  ;;  %v636_v7 = vunpack.i.h.bf16 %v634_v1  ;;  %v635_v8 = vunpack.i.l.bf16 %v634_v1 }
 0x133   : > { %v621_v53 = vunpack.i.h.bf16 %v619_v43  ;;  %v620_v54 = vunpack.i.l.bf16 %v619_v43 }
 0x134   : > { %v305_v14 = vsel %vm304_vm3, %v635_v8, %v636_v7 }
 0x135   : > { %v352_v63 = vsel %vm351_vm15, %v620_v54, %v621_v53  ;;  %v353_v0 = vsel %vm351_vm15, %v621_v53, %v350_v40 }
 0x139   : > { %v289_v19 = vpop.permute.xlu2 %288 }
 0x13a   : > { %v609_v44 = vpop.permute.xlu1 %608  ;;  %v629_v52 = vpop.permute.xlu0 %628 }
 0x13b   : > { %v611_v61 = vunpack.i.h.bf16 %v609_v44  ;;  %v610_v62 = vunpack.i.l.bf16 %v609_v44  ;;  %v631_v3 = vunpack.i.h.bf16 %v629_v52  ;;  %v630_v4 = vunpack.i.l.bf16 %v629_v52 }
 0x13d   : > { %v330_v9 = vsel %vm329_vm1, %v610_v62, %v611_v61  ;;  %v331_v10 = vsel %vm329_vm1, %v611_v61, %v328_v38  ;;  %v319_v12 = vsel %vm318_vm2, %v630_v4, %v631_v3 }
 0x142   : > { %v614_v47 = vpop.permute.xlu1 %613  ;;  %v303_v11 = vpop.permute.xlu0 %302 }
 0x143   : > { %v616_v50 = vunpack.i.h.bf16 %v614_v47  ;;  %v615_v51 = vunpack.i.l.bf16 %v614_v47  ;;  %v306_v15 = vsel %vm304_vm3, %v636_v7, %v303_v11 }
 0x145   : > { %v374_v55 = vsel %vm373_vm13, %v615_v51, %v616_v50  ;;  %v375_v56 = vsel %vm373_vm13, %v616_v50, %v372_v37 }
 0x146   : > { %396 = vmatpush.msra.mxu0 %v374_v55  ;;  %416 = vmatpush.msra.mxu1 %v375_v56 }
 0x148   : > { %397 = vmatpush.msra.mxu0 %v363_v59  ;;  %417 = vmatpush.msra.mxu1 %v364_v60 }
 0x14a   : > { %v317_v2 = vpop.permute.xlu1 %316  ;;  %398 = vmatpush.msra.mxu0 %v352_v63  ;;  %418 = vmatpush.msra.mxu1 %v353_v0  ;;  %v383_v23 = vpop.permute.xlu0 %382 }
 0x14b   : > { %v320_v13 = vsel %vm318_vm2, %v631_v3, %v317_v2 }
 0x14c   : > { %399 = vmatpush.msra.mxu0 %v341_v5  ;;  %419 = vmatpush.msra.mxu1 %v342_v6 }
 0x14e   : > { %400 = vmatpush.msra.mxu0 %v330_v9  ;;  %420 = vmatpush.msra.mxu1 %v331_v10 }
 0x150   : > { %401 = vmatpush.msra.mxu0 %v319_v12  ;;  %421 = vmatpush.msra.mxu1 %v320_v13 }
 0x152   : > { %v639_v16 = vpop.permute.xlu1 %638  ;;  %402 = vmatpush.msra.mxu0 %v305_v14  ;;  %422 = vmatpush.msra.mxu1 %v306_v15 }
 0x153   : > { %v641_v17 = vunpack.i.h.bf16 %v639_v16  ;;  %v640_v18 = vunpack.i.l.bf16 %v639_v16 }
 0x155   : > { %v291_v20 = vsel %vm290_vm4, %v640_v18, %v641_v17  ;;  %v292_v21 = vsel %vm290_vm4, %v641_v17, %v289_v19 }
 0x156   : > { %403 = vmatpush.msra.mxu0 %v291_v20  ;;  %423 = vmatpush.msra.mxu1 %v292_v21 }
 0x158   : > { %533 = vmatpush.msk.msra.mxu0 %vm532_vm5, %v874_v27  ;;  %536 = vmatpush.msk.msra.mxu1 %vm535_vm6, %v868_v25 }
 0x159   : > { %534 = vmatmul.msk.f32.vlgmr.msra.gmra.mxu0 %vm385_vm7, %v378_v22  ;;  %537 = vmatmul.msk.f32.vlgmr.msra.gmra.mxu1 %vm385_vm7, %v378_v22 }
 0x1d6   : > { %v406_v24 = vpop.f32.mrf.mxu0  ;;  %v426_v26 = vpop.f32.mrf.mxu1 }
 0x1d7   : > { %v407_v28 = vadd.f32 %v406_v24, %v383_v23  ;;  %v427_v29 = vadd.f32 %v426_v26, %v383_v23 }
 0x1d9   : > { %v429_v27 = vmax.f32 %v407_v28, 0.0  ;;  %v430_v25 = vmax.f32 %v427_v29, 0.0 }
 0x1db   : > { %431 = vst [vmem:[%s188_s23] sm:$0xff] %v429_v27 }
 0x1dc   : > { %432 = vst [vmem:[%s188_s23 + $0x8] sm:$0xff] %v430_v25 }
 0x1dd   : > { %700 = shalt.err (!%p697_p4)
}
 0x1de   : > { %547 = dma.vmem_to_hbm [thread:$0]  (%p822_p11), %s448_s5, 256, %s450_s6, %s434_s16  }
 0x1df PF: > { %s461_s26 = sand.u32 1, %s727_s12   ;;  %p945_p7 = scmp.ge.s32.totalorder %s739_s15, 2 }
 0x1e0   : > { %s462_s20 = scalar_lea.sflag [#allocation5], %s461_s26 }
 0x1e1   : > { %p554_p5 = pnand %p945_p7, %p826_p12 }
 0x1e3   : > { %p555_p8 = pneg %p554_p5 }
 0x1e5   : > { %722 = dma.done.wait (%p555_p8), %s462_s20, 256  }
 0x1e6   : > { %724 = vsyncadd (%p555_p8), %s462_s20, 4294967040  ;;  %p16_p10 = scmp.ge.s32.totalorder %s797_s18, 4   ;;  %s946_s12 = smov %s731_s13 }
 0x1e7   : > { %s947_s13 = smov %s735_s14  ;;  %s948_s14 = smov %s809_s21 }
 0x1e8   : > { %s949_s15 = smov %s797_s18  ;;  %18 = sbr.rel (!%p16_p10) target bundleno = 5 (0x5), region = 77 }
 0x1ed   :  { %468 = vsyncpa [#allocation4], 1 }
 0x1ee   :  { %470 = vsyncpa [#allocation4 + $0x1], 1 }
 0x1ef   :  { %471 = vsyncpa [#allocation5], 1 }
 0x1f0   :  { %473 = vsyncpa [#allocation5 + $0x1], 1 }

</bundles_post_ra>
